<compile_context>
chip_gen: v5e
topology: v5e:2x2
jax: 0.10.0
libtpu: 0.0.40
codegen_flags: <defaults>
</compile_context>

<pallas_src>
import jax
import jax.numpy as jnp
import numpy as np
from jax.experimental import pallas as pl
from jax.experimental.pallas import tpu as pltpu

NUM_CLASSES = 100
N_MODELS = 3
NH = N_MODELS * NUM_CLASSES        # 300: densely packed head width in HBM
C_PAD = 128                        # lane-padded classifier / output width


def _round_up(x, m):
    return -(-x // m) * m


def ensemble_kernel(x_ref, wh_ref, bh_ref, wc_ref, bc_ref, o_ref, acc_ref):
    """One D-tile of the fused ensemble forward.

    x_ref  : (B_pad, TK)      current tile of the flattened batch (stream dtype)
    wh_ref : (TK, NH=300)     current tile of the packed head weights (stream dtype)
    bh_ref : (1, NH)          packed head biases            (f32, resident)
    wc_ref : (NH, C_PAD)      packed classifier weight      (f32, resident)
    bc_ref : (1, C_PAD)       classifier bias               (f32, resident)
    o_ref  : (B_pad, C_PAD)   ensemble logits (written on last step only)
    acc_ref: (B_pad, NH) f32  VMEM accumulator for the head logits
    """
    k = pl.program_id(0)

    @pl.when(k == 0)
    def _():
        acc_ref[...] = jnp.zeros_like(acc_ref)

    # Steady state: single wide MXU matmul-accumulate over the D tiles
    # (all three heads at once via the column-packed weight).
    acc_ref[...] += jnp.dot(
        x_ref[...], wh_ref[...], preferred_element_type=jnp.float32
    )

    # Epilogue: head biases + fused concat/classifier matmul + bias + store.
    @pl.when(k == pl.num_programs(0) - 1)
    def _():
        logits = acc_ref[...] + bh_ref[...]                      # (B_pad, NH)
        out = jnp.dot(
            logits, wc_ref[...], preferred_element_type=jnp.float32
        ) + bc_ref[...]                                          # (B_pad, C_PAD)
        o_ref[...] = out.astype(o_ref.dtype)


def pack_ensemble_params(wh, bh, wc, bc, *, stream_dtype=jnp.bfloat16, tk=None):
    """One-time packing of the 3 head weights + classifier for the fused kernel.

    Call this ONCE at model-init time and reuse the result across forward
    calls (hoists the HBM-heavy packing out of the per-call path).

    wh : (3, D, C)  surrogate head weights (x @ W convention)
    bh : (3, 1, C)  head biases
    wc : (3, C, C)  classifier weight split into the 3 row-blocks matching
                    torch.cat((x1, x2, x3), dim=1)
    bc : (1, C)     classifier bias
    """
    D = int(wh.shape[1])
    C = NUM_CLASSES
    itemsize = jnp.dtype(stream_dtype).itemsize

    # Dtype-aware D-tile: big enough to amortize ~0.35 us/step grid overhead,
    # small enough that double-buffered tiles fit scoped VMEM on every chip.
    if tk is None:
        tk = 8192 if itemsize <= 2 else 4096
    TK = min(_round_up(tk, 128), _round_up(D, 128))
    nh_lanes = _round_up(NH, 128)              # VMEM lane padding of the wh tile
    while TK > 128 and 2 * TK * (nh_lanes + 8) * itemsize > 28 * 1024 * 1024:
        TK = _round_up(TK // 2, 128)
    D_pad = _round_up(D, TK)

    # Densely packed (no per-head lane pad) streamed weight / bias.
    wh_cat = jnp.zeros((D_pad, NH), stream_dtype)
    bh_cat = jnp.zeros((1, NH), jnp.float32)
    for m in range(N_MODELS):
        lo = m * C
        wh_cat = wh_cat.at[:D, lo:lo + C].set(wh[m].astype(stream_dtype))
        bh_cat = bh_cat.at[:, lo:lo + C].set(bh[m].astype(jnp.float32))

    # Classifier rows already follow torch.cat((x1, x2, x3), dim=1) ordering.
    wc_rows = jnp.concatenate([wc[m] for m in range(N_MODELS)], axis=0)  # (300, C)
    wc_cat = jnp.zeros((NH, C_PAD), jnp.float32).at[:, :C].set(
        wc_rows.astype(jnp.float32))
    bc_pad = jnp.zeros((1, C_PAD), jnp.float32).at[:, :C].set(
        bc.astype(jnp.float32))

    return dict(wh=wh_cat, bh=bh_cat, wc=wc_cat, bc=bc_pad,
                D=D, D_pad=D_pad, TK=TK, stream_dtype=stream_dtype)


def ensemble_forward(x_nchw, packed):
    """Fused ensemble forward using pre-packed parameters.

    x_nchw : (B, C, H, W) image batch.  Only x is padded per call; all weight
    packing lives in pack_ensemble_params (one-time).
    """
    B = x_nchw.shape[0]
    D, D_pad, TK = packed["D"], packed["D_pad"], packed["TK"]
    sdt = packed["stream_dtype"]
    C = NUM_CLASSES

    x_flat = x_nchw.reshape(B, -1)
    assert x_flat.shape[1] == D, "input feature size does not match packed params"

    B_pad = max(8, _round_up(B, 8))
    n_k = D_pad // TK

    x_p = jnp.zeros((B_pad, D_pad), sdt).at[:B, :D].set(x_flat.astype(sdt))

    itemsize = jnp.dtype(sdt).itemsize
    cost = pl.CostEstimate(
        flops=2 * B_pad * D_pad * NH + 2 * B_pad * NH * C_PAD,
        transcendentals=0,
        bytes_accessed=(B_pad * D_pad + D_pad * NH) * itemsize
        + (NH + NH * C_PAD + C_PAD + B_pad * C_PAD) * 4,
    )

    grid_spec = pltpu.PrefetchScalarGridSpec(
        num_scalar_prefetch=0,
        grid=(n_k,),
        in_specs=[
            pl.BlockSpec((B_pad, TK), lambda k: (0, k)),    # x tile (streamed)
            pl.BlockSpec((TK, NH), lambda k: (k, 0)),       # packed head W tile
            pl.BlockSpec((1, NH), lambda k: (0, 0)),        # head biases (resident)
            pl.BlockSpec((NH, C_PAD), lambda k: (0, 0)),    # classifier W (resident)
            pl.BlockSpec((1, C_PAD), lambda k: (0, 0)),     # classifier bias
        ],
        out_specs=pl.BlockSpec((B_pad, C_PAD), lambda k: (0, 0)),
        scratch_shapes=[pltpu.VMEM((B_pad, NH), jnp.float32)],
    )

    out_p = pl.pallas_call(
        ensemble_kernel,
        out_shape=jax.ShapeDtypeStruct((B_pad, C_PAD), jnp.float32),
        grid_spec=grid_spec,
        compiler_params=pltpu.CompilerParams(
            dimension_semantics=("arbitrary",),
            # Raise v5e's 16 MiB scoped default so large TK tiles fit; stays
            # well under v7x's 64 MiB physical VMEM.
            vmem_limit_bytes=48 * 1024 * 1024,
        ),
        cost_estimate=cost,
    )(x_p, packed["wh"], packed["bh"], packed["wc"], packed["bc"])

    return out_p[:B, :C]


def ensemble_reference(x_nchw, wh, bh, wc, bc):
    """Plain-JAX reference matching the PyTorch forward semantics."""
    B = x_nchw.shape[0]
    x_flat = x_nchw.reshape(B, -1).astype(jnp.float32)
    x1 = x_flat @ wh[0] + bh[0]                              # model_1(x)
    x2 = x_flat @ wh[1] + bh[1]                              # model_2(x)
    x3 = x_flat @ wh[2] + bh[2]                              # model_3(x)
    cat = jnp.concatenate([x1, x2, x3], axis=1)              # (B, 3C)
    w_cat = jnp.concatenate([wc[0], wc[1], wc[2]], axis=0)   # (3C, C)
    return cat @ w_cat + bc                                  # classifier


if __name__ == "__main__":
    B, Cin, H, W = 2, 3, 16, 16
    D = Cin * H * W
    C = NUM_CLASSES

    key = jax.random.PRNGKey(0)
    k_x, k_wh, k_bh, k_wc, k_bc = jax.random.split(key, 5)

    x = jax.random.normal(k_x, (B, Cin, H, W), dtype=jnp.float32)

    # Deterministic synthetic parameters (surrogate sub-model heads + classifier).
    wh = jax.random.normal(k_wh, (3, D, C), dtype=jnp.float32) * 0.02
    bh = jax.random.normal(k_bh, (3, 1, C), dtype=jnp.float32) * 0.01
    wc = jax.random.normal(k_wc, (3, C, C), dtype=jnp.float32) * 0.05
    bc = jax.random.normal(k_bc, (1, C), dtype=jnp.float32) * 0.01

    ref = ensemble_reference(x, wh, bh, wc, bc)

    # f32 streamed path with a small tile so the toy problem (D=768) exercises
    # the 3-step tiled accumulator pipeline; matches the reference tightly.
    packed_f32 = pack_ensemble_params(wh, bh, wc, bc,
                                      stream_dtype=jnp.float32, tk=256)
    out_f32 = jax.block_until_ready(ensemble_forward(x, packed_f32))
    np.testing.assert_allclose(np.asarray(out_f32), np.asarray(ref),
                               rtol=1e-4, atol=1e-4)
    assert out_f32.shape == (B, C) and out_f32.dtype == jnp.float32

    # Default bf16 streaming (the memory-bound production path); f32 accumulate.
    packed_bf16 = pack_ensemble_params(wh, bh, wc, bc, tk=256)
    out_bf16 = jax.block_until_ready(ensemble_forward(x, packed_bf16))
    np.testing.assert_allclose(np.asarray(out_bf16), np.asarray(ref),
                               rtol=2e-2, atol=2e-2)

    print("KERNEL_OK")
</pallas_src>

<mosaic_0001>
module attributes {stable_mosaic.version = 11 : i64} {
  func.func @ensemble_kernel(%arg0: i32, %arg1: memref<8x256xf32, #tpu.memory_space<vmem>>, %arg2: memref<256x300xf32, #tpu.memory_space<vmem>>, %arg3: memref<1x300xf32, #tpu.memory_space<vmem>>, %arg4: memref<300x128xf32, #tpu.memory_space<vmem>>, %arg5: memref<1x128xf32, #tpu.memory_space<vmem>>, %arg6: memref<8x128xf32, #tpu.memory_space<vmem>>, %arg7: memref<8x300xf32, #tpu.memory_space<vmem>>) attributes {dimension_semantics = [#tpu.dimension_semantics<arbitrary>], iteration_bounds = array<i64: 3>, scalar_prefetch = 0 : i64, scratch_operands = 1 : i64, tpu.core_type = #tpu.core_type<tc>, window_params = [{transform_indices = @transform_0, window_bounds = array<i64: 8, 256>}, {transform_indices = @transform_1, window_bounds = array<i64: 256, 300>}, {pipeline_mode = #tpu.pipeline_mode<synchronous>, transform_indices = @transform_2, window_bounds = array<i64: 1, 300>}, {pipeline_mode = #tpu.pipeline_mode<synchronous>, transform_indices = @transform_3, window_bounds = array<i64: 300, 128>}, {pipeline_mode = #tpu.pipeline_mode<synchronous>, transform_indices = @transform_4, window_bounds = array<i64: 1, 128>}, {pipeline_mode = #tpu.pipeline_mode<synchronous>, transform_indices = @transform_5, window_bounds = array<i64: 8, 128>}]} {
    %c0_i32 = arith.constant 0 : i32
    %0 = arith.cmpi eq, %arg0, %c0_i32 : i32
    %1 = arith.extui %0 : i1 to i32
    %c0_i32_0 = arith.constant 0 : i32
    %2 = arith.cmpi ne, %1, %c0_i32_0 : i32
    scf.if %2 {
      %cst_9 = arith.constant 0.000000e+00 : f32
      %12 = vector.broadcast %cst_9 : f32 to vector<8x300xf32>
      %c0_10 = arith.constant 0 : index
      %c0_11 = arith.constant 0 : index
      %13 = vector.load %arg7[%c0_10, %c0_11] : memref<8x300xf32, #tpu.memory_space<vmem>>, vector<8x300xf32>
      tpu.vector_store %arg7[%c0_10, %c0_11], %12 {strides = array<i32>} : memref<8x300xf32, #tpu.memory_space<vmem>>, vector<8x300xf32>,
    } else {
    }
    %c0 = arith.constant 0 : index
    %c0_1 = arith.constant 0 : index
    %3 = vector.load %arg7[%c0, %c0_1] : memref<8x300xf32, #tpu.memory_space<vmem>>, vector<8x300xf32>
    %c0_2 = arith.constant 0 : index
    %c0_3 = arith.constant 0 : index
    %4 = vector.load %arg1[%c0_2, %c0_3] : memref<8x256xf32, #tpu.memory_space<vmem>>, vector<8x256xf32>
    %c0_4 = arith.constant 0 : index
    %c0_5 = arith.constant 0 : index
    %5 = vector.load %arg2[%c0_4, %c0_5] : memref<256x300xf32, #tpu.memory_space<vmem>>, vector<256x300xf32>
    %cst = arith.constant dense<0.000000e+00> : vector<8x300xf32>
    %6 = tpu.matmul %4, %5, %cst {dimension_numbers = #tpu.dot_dimension_numbers<[1], [0], [0], [1], [0, 0, 1, 1], [], []>} : vector<8x256xf32>, vector<256x300xf32>, vector<8x300xf32> -> vector<8x300xf32>
    %7 = arith.addf %3, %6 : vector<8x300xf32>
    %c0_6 = arith.constant 0 : index
    %c0_7 = arith.constant 0 : index
    %8 = vector.load %arg7[%c0_6, %c0_7] : memref<8x300xf32, #tpu.memory_space<vmem>>, vector<8x300xf32>
    tpu.vector_store %arg7[%c0_6, %c0_7], %7 {strides = array<i32>} : memref<8x300xf32, #tpu.memory_space<vmem>>, vector<8x300xf32>,
    %c2_i32 = arith.constant 2 : i32
    %9 = arith.cmpi eq, %arg0, %c2_i32 : i32
    %10 = arith.extui %9 : i1 to i32
    %c0_i32_8 = arith.constant 0 : i32
    %11 = arith.cmpi ne, %10, %c0_i32_8 : i32
    scf.if %11 {
      %c0_9 = arith.constant 0 : index
      %c0_10 = arith.constant 0 : index
      %12 = vector.load %arg7[%c0_9, %c0_10] : memref<8x300xf32, #tpu.memory_space<vmem>>, vector<8x300xf32>
      %c0_11 = arith.constant 0 : index
      %c0_12 = arith.constant 0 : index
      %13 = vector.load %arg3[%c0_11, %c0_12] : memref<1x300xf32, #tpu.memory_space<vmem>>, vector<1x300xf32>
      %14 = vector.broadcast %13 : vector<1x300xf32> to vector<8x300xf32>
      %15 = arith.addf %12, %14 : vector<8x300xf32>
      %c0_13 = arith.constant 0 : index
      %c0_14 = arith.constant 0 : index
      %16 = vector.load %arg4[%c0_13, %c0_14] : memref<300x128xf32, #tpu.memory_space<vmem>>, vector<300x128xf32>
      %cst_15 = arith.constant dense<0.000000e+00> : vector<8x128xf32>
      %17 = tpu.matmul %15, %16, %cst_15 {dimension_numbers = #tpu.dot_dimension_numbers<[1], [0], [0], [1], [0, 0, 1, 1], [], []>} : vector<8x300xf32>, vector<300x128xf32>, vector<8x128xf32> -> vector<8x128xf32>
      %c0_16 = arith.constant 0 : index
      %c0_17 = arith.constant 0 : index
      %18 = vector.load %arg5[%c0_16, %c0_17] : memref<1x128xf32, #tpu.memory_space<vmem>>, vector<1x128xf32>
      %19 = vector.broadcast %18 : vector<1x128xf32> to vector<8x128xf32>
      %20 = arith.addf %17, %19 : vector<8x128xf32>
      %c0_18 = arith.constant 0 : index
      %c0_19 = arith.constant 0 : index
      %21 = vector.load %arg6[%c0_18, %c0_19] : memref<8x128xf32, #tpu.memory_space<vmem>>, vector<8x128xf32>
      tpu.vector_store %arg6[%c0_18, %c0_19], %20 {strides = array<i32>} : memref<8x128xf32, #tpu.memory_space<vmem>>, vector<8x128xf32>,
    } else {
    }
    return
  }
  func.func @transform_0(%arg0: i32) -> (i32, i32) {
    %c0_i32 = arith.constant 0 : i32
    %c0_i32_0 = arith.constant 0 : i32
    return %c0_i32, %arg0 : i32, i32
  }
  func.func @transform_1(%arg0: i32) -> (i32, i32) {
    %c0_i32 = arith.constant 0 : i32
    %c0_i32_0 = arith.constant 0 : i32
    return %arg0, %c0_i32 : i32, i32
  }
  func.func @transform_2(%arg0: i32) -> (i32, i32) {
    %c0_i32 = arith.constant 0 : i32
    %c0_i32_0 = arith.constant 0 : i32
    %c0_i32_1 = arith.constant 0 : i32
    return %c0_i32, %c0_i32_0 : i32, i32
  }
  func.func @transform_3(%arg0: i32) -> (i32, i32) {
    %c0_i32 = arith.constant 0 : i32
    %c0_i32_0 = arith.constant 0 : i32
    %c0_i32_1 = arith.constant 0 : i32
    return %c0_i32, %c0_i32_0 : i32, i32
  }
  func.func @transform_4(%arg0: i32) -> (i32, i32) {
    %c0_i32 = arith.constant 0 : i32
    %c0_i32_0 = arith.constant 0 : i32
    %c0_i32_1 = arith.constant 0 : i32
    return %c0_i32, %c0_i32_0 : i32, i32
  }
  func.func @transform_5(%arg0: i32) -> (i32, i32) {
    %c0_i32 = arith.constant 0 : i32
    %c0_i32_0 = arith.constant 0 : i32
    %c0_i32_1 = arith.constant 0 : i32
    return %c0_i32, %c0_i32_0 : i32, i32
  }
}

</mosaic_0001>

<bundles_post_ra>
// kernel: tpu_custom_call.1
= control target key start
LH: loop header
LB: loop body
LE: loop exit
PB: predicated region body
PF: predicated region fallthrough
CT: control target
= control target key end

     0   :  { %10 = vsyncpa [#allocation4], 0  ;;  %s768_s18 = smov 0   ;;  %s1019_s0 = inlined_call_operand.vmem [shape: f32[8,768], index: 0, kind: input, shape index: {}]   ;;  %s1020_s1 = inlined_call_operand.vmem [shape: f32[768,300], index: 1, kind: input, shape index: {}]   ;;  %s1021_s2 = inlined_call_operand.vmem [shape: f32[1,300], index: 2, kind: input, shape index: {}]   ;;  %s1022_s3 = inlined_call_operand.vmem [shape: f32[300,128], index: 3, kind: input, shape index: {}]   ;;  %s1023_s4 = inlined_call_operand.vmem [shape: f32[1,128], index: 4, kind: input, shape index: {}]   ;;  %s1024_s5 = inlined_call_operand.hbm [shape: f32[8,128], index: 5, kind: output, shape index: {}]  }
   0x1 LB: > { %s774_s19 = sadd.s32 4294967295, %s734_s18   ;;  %p665_p0 = scmp.ge.s32.totalorder %s734_s18, 1  ;;  %s734_s18 = sphi %s768_s18, %s16_s18  }
   0x2   : > { %p196_p1 = scmp.lt.s32.totalorder %s734_s18, 4 }
   0x4   : > { %p197_p2 = pnand %p665_p0, %p196_p1 }
   0x5   : > { %s666_s20 = sshll.u32 (!%p197_p2), %s774_s19, 1  ;;  %s668_s21 = sshll.u32 (!%p197_p2), %s774_s19, 5 }
   0x6   : > { %200 = sbr.rel (%p197_p2) target bundleno = 388 (0x184), region = 40  ;;  %p226_p3 = scmp.lt.s32.totalorder (!%p197_p2), %s666_s20, 5 }
   0x7   : > { %p232_p4 = scmp.lt.s32.totalorder (!%p197_p2), %s668_s21, 95  ;;  %p670_p5 = scmp.ne.s32.totalorder (!%p197_p2), %s774_s19, 0 }
   0xb   : > { %s1026_s20 = smov (!%p226_p3, %s666_s20), 5  ;;  %s1028_s21 = smov (!%p232_p4, %s668_s21), 95 }
   0xc   : > { %s667_s22 = sshll.u32 %s1026_s20, 3  ;;  %s678_s26 = smul.u32 24, %s1028_s21 }
   0xd   : > { %s783_s25 = scalar_lea.vmem %s1019_s0, %s667_s22  ;;  %241 = sbr.rel (%p670_p5) target bundleno = 22 (0x16), region = 44 }
   0xe   : > { %s788_s29 = scalar_lea.vmem %s1020_s1, %s678_s26 }
  0x12   : > { %vm244_vm0 = vcmask 359424   ;;  %v736_v0 = vmov 0.0  }
  0x13   : > { %242 = vst [vmem:[#allocation2] sm:$0xff] %v736_v0 }
  0x14   : > { %243 = vst [vmem:[#allocation2 + $0x8] sm:$0xff] %v736_v0 }
  0x15   : > { %245 = vst.msk [vmem:[#allocation2 + $0x10] sm:$0xff] %vm244_vm0, %v736_v0 }
  0x16 PF: > { %v296_v1 = vld [vmem:[%s788_s29 + $0x168] sm:$0xff]  ;;  %v293_v3 = vld [vmem:[%s788_s29 + $0x150] sm:$0xff]  ;;  %v290_v5 = vld [vmem:[%s788_s29 + $0x138] sm:$0xff]  ;;  %vm472_vm1 = vcmask 359424   ;;  %p671_p6 = scmp.ne.s32.totalorder %s774_s19, 2 }
  0x17   : > { %v344_v2 = vld [vmem:[%s788_s29 + $0x2e8] sm:$0xff]  ;;  %347 = vmatpush.msra.mxu0 %v296_v1  ;;  %v341_v4 = vld [vmem:[%s788_s29 + $0x2d0] sm:$0xff]  ;;  %v338_v6 = vld [vmem:[%s788_s29 + $0x2b8] sm:$0xff] }
  0x18   : > { %367 = vmatpush.msra.mxu1 %v344_v2  ;;  %v287_v7 = vld [vmem:[%s788_s29 + $0x120] sm:$0xff]  ;;  %v284_v9 = vld [vmem:[%s788_s29 + $0x108] sm:$0xff]  ;;  %v281_v11 = vld [vmem:[%s788_s29 + $0xf0] sm:$0xff] }
  0x19   : > { %348 = vmatpush.msra.mxu0 %v293_v3  ;;  %v335_v8 = vld [vmem:[%s788_s29 + $0x2a0] sm:$0xff]  ;;  %v332_v10 = vld [vmem:[%s788_s29 + $0x288] sm:$0xff]  ;;  %v329_v12 = vld [vmem:[%s788_s29 + $0x270] sm:$0xff] }
  0x1a   : > { %368 = vmatpush.msra.mxu1 %v341_v4  ;;  %v297_v13 = vld [vmem:[%s788_s29 + $0x170] sm:$0xff]  ;;  %v278_v14 = vld [vmem:[%s788_s29 + $0xd8] sm:$0xff]  ;;  %v291_v19 = vld [vmem:[%s788_s29 + $0x140] sm:$0xff] }
  0x1b   : > { %349 = vmatpush.msra.mxu0 %v290_v5  ;;  %v345_v15 = vld [vmem:[%s788_s29 + $0x2f0] sm:$0xff]  ;;  %v326_v16 = vld [vmem:[%s788_s29 + $0x258] sm:$0xff]  ;;  %387 = vmatpush.msra.mxu2 %v297_v13  ;;  %v339_v20 = vld [vmem:[%s788_s29 + $0x2c0] sm:$0xff] }
  0x1c   : > { %369 = vmatpush.msra.mxu1 %v338_v6  ;;  %407 = vmatpush.msra.mxu3 %v345_v15  ;;  %v294_v17 = vld [vmem:[%s788_s29 + $0x158] sm:$0xff]  ;;  %v275_v21 = vld [vmem:[%s788_s29 + $0xc0] sm:$0xff]  ;;  %v288_v23 = vld [vmem:[%s788_s29 + $0x128] sm:$0xff] }
  0x1d   : > { %350 = vmatpush.msra.mxu0 %v287_v7  ;;  %v342_v18 = vld [vmem:[%s788_s29 + $0x2d8] sm:$0xff]  ;;  %v323_v22 = vld [vmem:[%s788_s29 + $0x240] sm:$0xff]  ;;  %388 = vmatpush.msra.mxu2 %v294_v17  ;;  %v336_v24 = vld [vmem:[%s788_s29 + $0x2a8] sm:$0xff] }
  0x1e   : > { %370 = vmatpush.msra.mxu1 %v335_v8  ;;  %408 = vmatpush.msra.mxu3 %v342_v18  ;;  %v272_v25 = vld [vmem:[%s788_s29 + $0xa8] sm:$0xff]  ;;  %v285_v27 = vld [vmem:[%s788_s29 + $0x110] sm:$0xff]  ;;  %v282_v31 = vld [vmem:[%s788_s29 + $0xf8] sm:$0xff] }
  0x1f   : > { %351 = vmatpush.msra.mxu0 %v284_v9  ;;  %v320_v26 = vld [vmem:[%s788_s29 + $0x228] sm:$0xff]  ;;  %389 = vmatpush.msra.mxu2 %v291_v19  ;;  %v333_v28 = vld [vmem:[%s788_s29 + $0x290] sm:$0xff]  ;;  %v330_v32 = vld [vmem:[%s788_s29 + $0x278] sm:$0xff] }
  0x20   : > { %371 = vmatpush.msra.mxu1 %v332_v10  ;;  %409 = vmatpush.msra.mxu3 %v339_v20  ;;  %v269_v29 = vld [vmem:[%s788_s29 + $0x90] sm:$0xff]  ;;  %v266_v33 = vld [vmem:[%s788_s29 + $0x78] sm:$0xff]  ;;  %v279_v35 = vld [vmem:[%s788_s29 + $0xe0] sm:$0xff] }
  0x21   : > { %352 = vmatpush.msra.mxu0 %v281_v11  ;;  %v317_v30 = vld [vmem:[%s788_s29 + $0x210] sm:$0xff]  ;;  %390 = vmatpush.msra.mxu2 %v288_v23  ;;  %v314_v34 = vld [vmem:[%s788_s29 + $0x1f8] sm:$0xff]  ;;  %v327_v36 = vld [vmem:[%s788_s29 + $0x260] sm:$0xff] }
  0x22   : > { %372 = vmatpush.msra.mxu1 %v329_v12  ;;  %410 = vmatpush.msra.mxu3 %v336_v24  ;;  %v263_v37 = vld [vmem:[%s788_s29 + $0x60] sm:$0xff]  ;;  %v276_v39 = vld [vmem:[%s788_s29 + $0xc8] sm:$0xff]  ;;  %v273_v43 = vld [vmem:[%s788_s29 + $0xb0] sm:$0xff] }
  0x23   : > { %353 = vmatpush.msra.mxu0 %v278_v14  ;;  %391 = vmatpush.msra.mxu2 %v285_v27  ;;  %v311_v38 = vld [vmem:[%s788_s29 + $0x1e0] sm:$0xff]  ;;  %v324_v40 = vld [vmem:[%s788_s29 + $0x248] sm:$0xff]  ;;  %v321_v44 = vld [vmem:[%s788_s29 + $0x230] sm:$0xff] }
  0x24   : > { %373 = vmatpush.msra.mxu1 %v326_v16  ;;  %411 = vmatpush.msra.mxu3 %v333_v28  ;;  %v260_v41 = vld [vmem:[%s788_s29 + $0x48] sm:$0xff]  ;;  %v257_v45 = vld [vmem:[%s788_s29 + $0x30] sm:$0xff]  ;;  %v270_v47 = vld [vmem:[%s788_s29 + $0x98] sm:$0xff] }
  0x25   : > { %354 = vmatpush.msra.mxu0 %v275_v21  ;;  %392 = vmatpush.msra.mxu2 %v282_v31  ;;  %v308_v42 = vld [vmem:[%s788_s29 + $0x1c8] sm:$0xff]  ;;  %v305_v46 = vld [vmem:[%s788_s29 + $0x1b0] sm:$0xff]  ;;  %v318_v48 = vld [vmem:[%s788_s29 + $0x218] sm:$0xff] }
  0x26   : > { %374 = vmatpush.msra.mxu1 %v323_v22  ;;  %412 = vmatpush.msra.mxu3 %v330_v32  ;;  %v254_v49 = vld [vmem:[%s788_s29 + $0x18] sm:$0xff]  ;;  %v267_v51 = vld [vmem:[%s788_s29 + $0x80] sm:$0xff]  ;;  %v264_v57 = vld [vmem:[%s788_s29 + $0x68] sm:$0xff] }
  0x27   : > { %355 = vmatpush.msra.mxu0 %v272_v25  ;;  %393 = vmatpush.msra.mxu2 %v279_v35  ;;  %v302_v50 = vld [vmem:[%s788_s29 + $0x198] sm:$0xff]  ;;  %v315_v52 = vld [vmem:[%s788_s29 + $0x200] sm:$0xff]  ;;  %v312_v58 = vld [vmem:[%s788_s29 + $0x1e8] sm:$0xff] }
  0x28   : > { %375 = vmatpush.msra.mxu1 %v320_v26  ;;  %413 = vmatpush.msra.mxu3 %v327_v36  ;;  %v251_v53 = vld [vmem:[%s788_s29] sm:$0xff]  ;;  %v298_v55 = vld [vmem:[%s788_s29 + $0x178] sm:$0xff]  ;;  %v261_v61 = vld [vmem:[%s788_s29 + $0x50] sm:$0xff] }
  0x29   : > { %356 = vmatpush.msra.mxu0 %v269_v29  ;;  %394 = vmatpush.msra.mxu2 %v276_v39  ;;  %v299_v54 = vld [vmem:[%s788_s29 + $0x180] sm:$0xff]  ;;  %v346_v56 = vld [vmem:[%s788_s29 + $0x2f8] sm:$0xff]  ;;  %v309_v62 = vld [vmem:[%s788_s29 + $0x1d0] sm:$0xff] }
  0x2a   : > { %376 = vmatpush.msra.mxu1 %v317_v30  ;;  %414 = vmatpush.msra.mxu3 %v324_v40  ;;  %v295_v59 = vld [vmem:[%s788_s29 + $0x160] sm:$0xff]  ;;  %v292_v63 = vld [vmem:[%s788_s29 + $0x148] sm:$0xff]  ;;  %v258_v1 = vld [vmem:[%s788_s29 + $0x38] sm:$0xff] }
  0x2b   : > { %357 = vmatpush.msra.mxu0 %v266_v33  ;;  %395 = vmatpush.msra.mxu2 %v273_v43  ;;  %v343_v60 = vld [vmem:[%s788_s29 + $0x2e0] sm:$0xff]  ;;  %v340_v0 = vld [vmem:[%s788_s29 + $0x2c8] sm:$0xff]  ;;  %v306_v2 = vld [vmem:[%s788_s29 + $0x1b8] sm:$0xff] }
  0x2c   : > { %377 = vmatpush.msra.mxu1 %v314_v34  ;;  %415 = vmatpush.msra.mxu3 %v321_v44  ;;  %v289_v3 = vld [vmem:[%s788_s29 + $0x130] sm:$0xff]  ;;  %v255_v5 = vld [vmem:[%s788_s29 + $0x20] sm:$0xff]  ;;  %v286_v7 = vld [vmem:[%s788_s29 + $0x118] sm:$0xff] }
  0x2d   : > { %358 = vmatpush.msra.mxu0 %v263_v37  ;;  %396 = vmatpush.msra.mxu2 %v270_v47  ;;  %v337_v4 = vld [vmem:[%s788_s29 + $0x2b0] sm:$0xff]  ;;  %v303_v6 = vld [vmem:[%s788_s29 + $0x1a0] sm:$0xff]  ;;  %v334_v8 = vld [vmem:[%s788_s29 + $0x298] sm:$0xff] }
  0x2e   : > { %378 = vmatpush.msra.mxu1 %v311_v38  ;;  %416 = vmatpush.msra.mxu3 %v318_v48  ;;  %v249_v9 = vld [vmem:[%s783_s25] sm:$0xff]  ;;  %v250_v10 = vld [vmem:[%s783_s25 + $0x8] sm:$0xff]  ;;  %v277_v17 = vld [vmem:[%s788_s29 + $0xd0] sm:$0xff] }
  0x2f   : > { %359 = vmatpush.msra.mxu0 %v260_v41  ;;  %397 = vmatpush.msra.mxu2 %v267_v51  ;;  %v283_v11 = vld [vmem:[%s788_s29 + $0x100] sm:$0xff]  ;;  %v252_v13 = vld [vmem:[%s788_s29 + $0x8] sm:$0xff]  ;;  %v325_v18 = vld [vmem:[%s788_s29 + $0x250] sm:$0xff] }
  0x30   : > { %379 = vmatpush.msra.mxu1 %v308_v42  ;;  %417 = vmatpush.msra.mxu3 %v315_v52  ;;  %v331_v12 = vld [vmem:[%s788_s29 + $0x280] sm:$0xff]  ;;  %v300_v14 = vld [vmem:[%s788_s29 + $0x188] sm:$0xff]  ;;  %v274_v19 = vld [vmem:[%s788_s29 + $0xb8] sm:$0xff] }
  0x31   : > { %360 = vmatpush.msra.mxu0 %v257_v45  ;;  %398 = vmatpush.msra.mxu2 %v264_v57  ;;  %v280_v15 = vld [vmem:[%s788_s29 + $0xe8] sm:$0xff]  ;;  %v322_v20 = vld [vmem:[%s788_s29 + $0x238] sm:$0xff]  ;;  %v271_v21 = vld [vmem:[%s788_s29 + $0xa0] sm:$0xff] }
  0x32   : > { %380 = vmatpush.msra.mxu1 %v305_v46  ;;  %418 = vmatpush.msra.mxu3 %v312_v58  ;;  %v328_v16 = vld [vmem:[%s788_s29 + $0x268] sm:$0xff]  ;;  %v319_v22 = vld [vmem:[%s788_s29 + $0x220] sm:$0xff]  ;;  %v265_v25 = vld [vmem:[%s788_s29 + $0x70] sm:$0xff] }
  0x33   : > { %361 = vmatpush.msra.mxu0 %v254_v49  ;;  %399 = vmatpush.msra.mxu2 %v261_v61  ;;  %v268_v23 = vld [vmem:[%s788_s29 + $0x88] sm:$0xff]  ;;  %v313_v26 = vld [vmem:[%s788_s29 + $0x1f0] sm:$0xff]  ;;  %v262_v27 = vld [vmem:[%s788_s29 + $0x58] sm:$0xff] }
  0x34   : > { %381 = vmatpush.msra.mxu1 %v302_v50  ;;  %419 = vmatpush.msra.mxu3 %v309_v62  ;;  %v316_v24 = vld [vmem:[%s788_s29 + $0x208] sm:$0xff]  ;;  %v310_v28 = vld [vmem:[%s788_s29 + $0x1d8] sm:$0xff]  ;;  %v259_v29 = vld [vmem:[%s788_s29 + $0x40] sm:$0xff] }
  0x35   : > { %362 = vmatpush.msra.mxu0 %v251_v53  ;;  %400 = vmatpush.msra.mxu2 %v258_v1  ;;  %v307_v30 = vld [vmem:[%s788_s29 + $0x1c0] sm:$0xff]  ;;  %v256_v31 = vld [vmem:[%s788_s29 + $0x28] sm:$0xff]  ;;  %v253_v33 = vld [vmem:[%s788_s29 + $0x10] sm:$0xff] }
  0x36   : > { %382 = vmatpush.msra.mxu1 %v299_v54  ;;  %420 = vmatpush.msra.mxu3 %v306_v2  ;;  %v304_v32 = vld [vmem:[%s788_s29 + $0x1a8] sm:$0xff]  ;;  %v301_v34 = vld [vmem:[%s788_s29 + $0x190] sm:$0xff]  ;;  %v246_v36 = vld [vmem:[#allocation2] sm:$0xff] }
  0x37   : > { %427 = vmatpush.msrb.mxu0 %v298_v55  ;;  %401 = vmatpush.msra.mxu2 %v255_v5  ;;  %v247_v41 = vld [vmem:[#allocation2 + $0x8] sm:$0xff]  ;;  %v248_v46 = vld [vmem:[#allocation2 + $0x10] sm:$0xff] }
  0x38   : > { %447 = vmatpush.msrb.mxu1 %v346_v56  ;;  %421 = vmatpush.msra.mxu3 %v303_v6 }
  0x39   : > { %428 = vmatpush.msrb.mxu0 %v295_v59  ;;  %383 = vmatmul.f32.vlgmr.msra.gmra.mxu1 %v250_v10 }
  0x3a   : > { %448 = vmatpush.msrb.mxu1 %v343_v60  ;;  %363 = vmatmul.f32.vlgmr.msra.gmra.mxu0 %v249_v9 }
  0x3b   : > { %429 = vmatpush.msrb.mxu0 %v292_v63  ;;  %402 = vmatpush.msra.mxu2 %v252_v13 }
  0x3c   : > { %449 = vmatpush.msrb.mxu1 %v340_v0  ;;  %422 = vmatpush.msra.mxu3 %v300_v14 }
  0x3d   : > { %430 = vmatpush.msrb.mxu0 %v289_v3  ;;  %403 = vmatmul.f32.vlgmr.msra.gmra.mxu2 %v249_v9 }
  0x3e   : > { %450 = vmatpush.msrb.mxu1 %v337_v4  ;;  %423 = vmatmul.f32.vlgmr.msra.gmra.mxu3 %v250_v10 }
  0x3f   : > { %431 = vmatpush.msrb.mxu0 %v286_v7 }
  0x40   : > { %451 = vmatpush.msrb.mxu1 %v334_v8 }
  0x41   : > { %432 = vmatpush.msrb.mxu0 %v283_v11 }
  0x42   : > { %452 = vmatpush.msrb.mxu1 %v331_v12 }
  0x43   : > { %433 = vmatpush.msrb.mxu0 %v280_v15 }
  0x44   : > { %453 = vmatpush.msrb.mxu1 %v328_v16 }
  0x45   : > { %434 = vmatpush.msrb.mxu0 %v277_v17 }
  0x46   : > { %454 = vmatpush.msrb.mxu1 %v325_v18 }
  0x47   : > { %435 = vmatpush.msrb.mxu0 %v274_v19 }
  0x48   : > { %455 = vmatpush.msrb.mxu1 %v322_v20 }
  0x49   : > { %436 = vmatpush.msrb.mxu0 %v271_v21 }
  0x4a   : > { %456 = vmatpush.msrb.mxu1 %v319_v22 }
  0x4b   : > { %437 = vmatpush.msrb.mxu0 %v268_v23 }
  0x4c   : > { %457 = vmatpush.msrb.mxu1 %v316_v24 }
  0x4d   : > { %438 = vmatpush.msrb.mxu0 %v265_v25 }
  0x4e   : > { %458 = vmatpush.msrb.mxu1 %v313_v26 }
  0x4f   : > { %439 = vmatpush.msrb.mxu0 %v262_v27 }
  0x50   : > { %459 = vmatpush.msrb.mxu1 %v310_v28 }
  0x51   : > { %440 = vmatpush.msrb.mxu0 %v259_v29 }
  0x52   : > { %460 = vmatpush.msrb.mxu1 %v307_v30 }
  0x53   : > { %441 = vmatpush.msrb.mxu0 %v256_v31 }
  0x54   : > { %461 = vmatpush.msrb.mxu1 %v304_v32 }
  0x55   : > { %442 = vmatpush.msrb.mxu0 %v253_v33 }
  0x56   : > { %462 = vmatpush.msrb.mxu1 %v301_v34  ;;  %443 = vmatmul.f32.vlgmr.msrb.gmra.mxu0 %v249_v9 }
  0x57   : > { %463 = vmatmul.f32.vlgmr.msrb.gmra.mxu1 %v250_v10 }
  0xb6   : > { %v384_v37 = vpop.f32.mrf.mxu1 }
  0xb7   : > { %v364_v35 = vpop.f32.mrf.mxu0 }
  0xb8   : > { %v385_v38 = vadd.f32 %v384_v37, %v364_v35 }
  0xba   : > { %v467_v39 = vadd.f32 %v385_v38, %v246_v36 }
  0xbc   : > { %470 = vst [vmem:[#allocation2] sm:$0xff] %v467_v39 }
  0xc0   : > { %v404_v40 = vpop.f32.mrf.mxu2 }
  0xc1   : > { %v424_v42 = vpop.f32.mrf.mxu3 }
  0xc2   : > { %v425_v43 = vadd.f32 %v424_v42, %v404_v40 }
  0xc4   : > { %v468_v44 = vadd.f32 %v425_v43, %v247_v41 }
  0xc6   : > { %471 = vst [vmem:[#allocation2 + $0x8] sm:$0xff] %v468_v44 }
  0xd3   : > { %v444_v45 = vpop.f32.mrf.mxu0 }
  0xd4   : > { %v464_v47 = vpop.f32.mrf.mxu1 }
  0xd5   : > { %v465_v48 = vadd.f32 %v464_v47, %v444_v45  ;;  %477 = sbr.rel (%p671_p6) target bundleno = 383 (0x17f), region = 48 }
  0xd7   : > { %v469_v49 = vadd.f32 %v465_v48, %v248_v46 }
  0xd9   : > { %473 = vst.msk [vmem:[#allocation2 + $0x10] sm:$0xff] %vm472_vm1, %v469_v49 }
  0xda   : > { %v507_v50 = vld [vmem:[%s1022_s3 + $0x78] sm:$0xff]  ;;  %v506_v51 = vld [vmem:[%s1022_s3 + $0x70] sm:$0xff]  ;;  %v505_v54 = vld [vmem:[%s1022_s3 + $0x68] sm:$0xff]  ;;  %vm537_vm2 = vcmask 1043456  }
  0xdb   : > { %v523_v52 = vld [vmem:[%s1022_s3 + $0xf8] sm:$0xff]  ;;  %541 = vmatpush.msra.mxu0 %v507_v50  ;;  %v522_v53 = vld [vmem:[%s1022_s3 + $0xf0] sm:$0xff]  ;;  %v521_v55 = vld [vmem:[%s1022_s3 + $0xe8] sm:$0xff] }
  0xdc   : > { %561 = vmatpush.msra.mxu1 %v523_v52  ;;  %v504_v56 = vld [vmem:[%s1022_s3 + $0x60] sm:$0xff]  ;;  %v503_v58 = vld [vmem:[%s1022_s3 + $0x58] sm:$0xff]  ;;  %v529_v60 = vld [vmem:[%s1022_s3 + $0x128] sm:$0xf] }
  0xdd   : > { %542 = vmatpush.msra.mxu0 %v506_v51  ;;  %v520_v57 = vld [vmem:[%s1022_s3 + $0xe0] sm:$0xff]  ;;  %v519_v59 = vld [vmem:[%s1022_s3 + $0xd8] sm:$0xff]  ;;  %v502_v62 = vld [vmem:[%s1022_s3 + $0x50] sm:$0xff]  ;;  %672 = vmatpush.msk.msra.mxu2 %vm537_vm2, %v529_v60 }
  0xde   : > { %562 = vmatpush.msra.mxu1 %v522_v53  ;;  %v528_v61 = vld [vmem:[%s1022_s3 + $0x120] sm:$0xff]  ;;  %v518_v63 = vld [vmem:[%s1022_s3 + $0xd0] sm:$0xff]  ;;  %v527_v0 = vld [vmem:[%s1022_s3 + $0x118] sm:$0xff] }
  0xdf   : > { %543 = vmatpush.msra.mxu0 %v505_v54  ;;  %v501_v1 = vld [vmem:[%s1022_s3 + $0x48] sm:$0xff]  ;;  %592 = vmatpush.msra.mxu2 %v528_v61  ;;  %v526_v3 = vld [vmem:[%s1022_s3 + $0x110] sm:$0xff]  ;;  %v500_v4 = vld [vmem:[%s1022_s3 + $0x40] sm:$0xff] }
  0xe0   : > { %563 = vmatpush.msra.mxu1 %v521_v55  ;;  %v517_v2 = vld [vmem:[%s1022_s3 + $0xc8] sm:$0xff]  ;;  %v516_v5 = vld [vmem:[%s1022_s3 + $0xc0] sm:$0xff]  ;;  %v480_v8 = vld [vmem:[#allocation2 + $0x10] sm:$0xff] }
  0xe1   : > { %544 = vmatpush.msra.mxu0 %v504_v56  ;;  %593 = vmatpush.msra.mxu2 %v527_v0  ;;  %v481_v6 = vld [vmem:[%s1021_s2] sm:$0x7]  ;;  %v525_v7 = vld [vmem:[%s1022_s3 + $0x108] sm:$0xff]  ;;  %v499_v10 = vld [vmem:[%s1022_s3 + $0x38] sm:$0xff] }
  0xe2   : > { %564 = vmatpush.msra.mxu1 %v520_v57  ;;  %v485_v9 = vperm.slane %v481_v6, 2  ;;  %v515_v11 = vld [vmem:[%s1022_s3 + $0xb8] sm:$0xff]  ;;  %v524_v12 = vld [vmem:[%s1022_s3 + $0x100] sm:$0xff]  ;;  %v498_v13 = vld [vmem:[%s1022_s3 + $0x30] sm:$0xff]  ;;  %v483_v24 = vperm.slane %v481_v6, 0  ;;  %v484_v25 = vperm.slane %v481_v6, 1 }
  0xe3   : > { %545 = vmatpush.msra.mxu0 %v503_v58  ;;  %594 = vmatpush.msra.mxu2 %v526_v3  ;;  %v514_v14 = vld [vmem:[%s1022_s3 + $0xb0] sm:$0xff]  ;;  %v497_v16 = vld [vmem:[%s1022_s3 + $0x28] sm:$0xff]  ;;  %v496_v18 = vld [vmem:[%s1022_s3 + $0x20] sm:$0xff] }
  0xe4   : > { %565 = vmatpush.msra.mxu1 %v519_v59  ;;  %v491_v15 = vadd.f32 %v485_v9, %v480_v8  ;;  %v513_v17 = vld [vmem:[%s1022_s3 + $0xa8] sm:$0xff]  ;;  %v512_v19 = vld [vmem:[%s1022_s3 + $0xa0] sm:$0xff]  ;;  %v495_v20 = vld [vmem:[%s1022_s3 + $0x18] sm:$0xff] }
  0xe5   : > { %546 = vmatpush.msra.mxu0 %v502_v62  ;;  %595 = vmatpush.msra.mxu2 %v525_v7  ;;  %v511_v21 = vld [vmem:[%s1022_s3 + $0x98] sm:$0xff]  ;;  %v494_v22 = vld [vmem:[%s1022_s3 + $0x10] sm:$0xff]  ;;  %v478_v26 = vld [vmem:[#allocation2] sm:$0xff] }
  0xe6   : > { %566 = vmatpush.msra.mxu1 %v518_v63  ;;  %v510_v23 = vld [vmem:[%s1022_s3 + $0x90] sm:$0xff]  ;;  %v479_v27 = vld [vmem:[#allocation2 + $0x8] sm:$0xff]  ;;  %v492_v30 = vld [vmem:[%s1022_s3] sm:$0xff]  ;;  %v489_v31 = vadd.f32 %v483_v24, %v478_v26 }
  0xe7   : > { %547 = vmatpush.msra.mxu0 %v501_v1  ;;  %596 = vmatpush.msra.mxu2 %v524_v12  ;;  %v493_v28 = vld [vmem:[%s1022_s3 + $0x8] sm:$0xff]  ;;  %v508_v32 = vld [vmem:[%s1022_s3 + $0x80] sm:$0xff]  ;;  %v490_v33 = vadd.f32 %v484_v25, %v479_v27 }
  0xe8   : > { %567 = vmatpush.msra.mxu1 %v517_v2  ;;  %673 = vmatmul.msk.f32.vlgmr.msra.gmra.mxu2 %vm472_vm1, %v491_v15  ;;  %v509_v29 = vld [vmem:[%s1022_s3 + $0x88] sm:$0xff]  ;;  %v695_v34 = vld [vmem:[%s1023_s4] ss:$0 sm:$0xff] }
  0xe9   : > { %548 = vmatpush.msra.mxu0 %v500_v4 }
  0xea   : > { %568 = vmatpush.msra.mxu1 %v516_v5 }
  0xeb   : > { %549 = vmatpush.msra.mxu0 %v499_v10 }
  0xec   : > { %569 = vmatpush.msra.mxu1 %v515_v11 }
  0xed   : > { %550 = vmatpush.msra.mxu0 %v498_v13 }
  0xee   : > { %570 = vmatpush.msra.mxu1 %v514_v14 }
  0xef   : > { %551 = vmatpush.msra.mxu0 %v497_v16 }
  0xf0   : > { %571 = vmatpush.msra.mxu1 %v513_v17 }
  0xf1   : > { %552 = vmatpush.msra.mxu0 %v496_v18 }
  0xf2   : > { %572 = vmatpush.msra.mxu1 %v512_v19 }
  0xf3   : > { %553 = vmatpush.msra.mxu0 %v495_v20 }
  0xf4   : > { %573 = vmatpush.msra.mxu1 %v511_v21 }
  0xf5   : > { %554 = vmatpush.msra.mxu0 %v494_v22 }
  0xf6   : > { %574 = vmatpush.msra.mxu1 %v510_v23 }
  0xf7   : > { %555 = vmatpush.msra.mxu0 %v493_v28 }
  0xf8   : > { %575 = vmatpush.msra.mxu1 %v509_v29 }
  0xf9   : > { %556 = vmatpush.msra.mxu0 %v492_v30 }
  0xfa   : > { %576 = vmatpush.msra.mxu1 %v508_v32  ;;  %557 = vmatmul.f32.vlgmr.msra.gmra.mxu0 %v489_v31 }
  0xfb   : > { %577 = vmatmul.f32.vlgmr.msra.gmra.mxu1 %v490_v33 }
 0x16b   : > { %v598_v38 = vpop.f32.mrf.mxu2 }
 0x177   : > { %v558_v35 = vpop.f32.mrf.mxu0 }
 0x178   : > { %v578_v36 = vpop.f32.mrf.mxu1  ;;  %v559_v37 = vadd.f32 %v695_v34, %v558_v35 }
 0x17a   : > { %v579_v39 = vadd.f32 %v578_v36, %v559_v37 }
 0x17c   : > { %v599_v40 = vadd.f32 %v598_v38, %v579_v39 }
 0x17e   : > { %601 = vst [vmem:[#allocation3] sm:$0xff] %v599_v40 }
 0x17f PF: > { %p683_p7 = scmp.eq.s32.totalorder %s774_s19, 2  ;;  %s737_s16 = smov [#allocation3]  }
 0x180   : > { %s608_s17 = sshll.u32 %s737_s16, 4  ;;  %s610_s22 = sshll.u32 %s1024_s5, 4  ;;  %s609_s17 = int_to_ptr.vmem [resolvable:$true] %s608_s17  ;;  %s611_s22 = int_to_ptr.hbm [resolvable:$true] %s610_s22 }
 0x181   : > { %680 = dma.vmem_to_hbm [thread:$0]  (%p683_p7), %s609_s17, 128, %s611_s22, [#allocation4]  }
 0x182   : > { %729 = dma.done.wait (%p683_p7), [#allocation4], 128  }
 0x183   : > { %731 = vsyncadd (%p683_p7), [#allocation4], 4294967168 }
 0x184 PF: > { %s16_s18 = sadd.s32 1, %s734_s18  }
 0x185   : > { %p13_p8 = scmp.ge.s32.totalorder %s16_s18, 5  }
 0x187   :  { %15 = sbr.rel (!%p13_p8) target bundleno = 1 (0x1), region = 78 }
 0x18c   :  { %624 = vsyncpa [#allocation4], 1 }
 0x18d   :  { %626 = vsyncpa [#allocation4 + $0x1], 1 }

</bundles_post_ra>
